<compile_context>
chip_gen: v7x
topology: tpu7x:2x2x1
jax: 0.10.0
libtpu: 0.0.40
codegen_flags: <defaults>
</compile_context>

<pallas_src>
import functools

import numpy as np
import jax
import jax.numpy as jnp
from jax.experimental import pallas as pl
from jax.experimental.pallas import tpu as pltpu

# "settings" from the original module, fixed deterministically in-script.
S = 7
B = 2
LAMBDA_COORD = 5.0
LAMBDA_NOOBJ = 0.5
IMG_SIZE = 448.0
N_CH = 30          # B * 5 + 20 classes
C_PAD = 32         # channels padded to a sublane multiple

# Kernel-internal channel order (applied by the wrapper):
#   rows  0..7  : x1, x2, y1, y2, w1, w2, h1, h2   (box coords, sublane-packed)
#   rows  8..27 : 20 class channels (orig 10..29)
#   row   28    : confidence of box 1 (orig ch 4)  -> obj / no-obj mask source
#   row   29    : confidence of box 2 (orig ch 9)
#   rows 30..31 : zero padding
_PERM = np.array([0, 5, 1, 6, 2, 7, 3, 8] + list(range(10, 30)) + [4, 9],
                 dtype=np.int32)


def _round_up(x, m):
    return (x + m - 1) // m * m


def _yolo_loss_kernel(pred_ref, target_ref, iou_ref, part_ref, *, img_size):
    p = pred_ref[...]                       # (C_PAD, TM), cells on the lane axis
    t = target_ref[...]

    conf_t = t[28:29, :]                    # box-1 confidence (orig channel 4)
    obj_b = conf_t > 0.0
    obj = obj_b.astype(jnp.float32)
    # Exact ==0 matches the PyTorch reference; zero-padded tail lanes also
    # land here but their squared diffs are exactly 0, so they add nothing.
    noobj = (conf_t == 0.0).astype(jnp.float32)

    # ---- per-lane partial losses (sublane reduce only; lane reduce in wrapper)
    cls_d = p[8:28, :] - t[8:28, :]         # 20 class channels
    part_ref[0:1, :] = jnp.sum(cls_d * cls_d, axis=0, keepdims=True) * obj
    conf_d = p[28:30, :] - t[28:30, :]      # the two confidence channels
    part_ref[1:2, :] = jnp.sum(conf_d * conf_d, axis=0, keepdims=True) * noobj

    # ---- IoU (YOLO-style, +1 pixel), packed over sublanes ----
    pb = p[0:8, :] * img_size               # [x1,x2,y1,y2,w1,w2,h1,h2] scaled
    tb = t[0:8, :] * img_size
    pc, pwh = pb[0:4, :], pb[4:8, :]        # centers / sizes, both boxes at once
    tc, twh = tb[0:4, :], tb[4:8, :]

    tl = jnp.maximum(pc - 0.5 * pwh, tc - 0.5 * twh)   # [tlx1,tlx2,tly1,tly2]
    br = jnp.minimum(pc + 0.5 * pwh, tc + 0.5 * twh)
    side = jnp.maximum(br - tl + 1.0, 0.0)             # x-extents | y-extents
    inter = side[0:2, :] * side[2:4, :]                # (2, TM): box1, box2
    pa = (pwh[0:2, :] + 1.0) * (pwh[2:4, :] + 1.0)
    ta = (twh[0:2, :] + 1.0) * (twh[2:4, :] + 1.0)
    union = pa + ta - inter
    iou = inter * pl.reciprocal(union, approx=True)    # EUP slot (free here)
    iou_ref[...] = jnp.where(obj_b, iou, 0.0)          # lane-dense (2, TM) store


@functools.partial(jax.jit, static_argnums=(2,))
def _yolo_loss_impl(pred, target, img_size):
    N = pred.shape[0]
    M = N * S * S
    TM = min(4096, _round_up(M, 128))       # lane tile along the cell axis
    M_pad = _round_up(M, TM)

    def to_kernel_layout(x):
        # channels-first, kernel channel order, padded to (C_PAD, M_pad).
        x2 = x.reshape(M, N_CH).astype(jnp.float32)
        return jnp.pad(x2.T[_PERM, :], ((0, C_PAD - N_CH), (0, M_pad - M)))

    pred_p = to_kernel_layout(pred)
    target_p = to_kernel_layout(target)

    kernel = functools.partial(_yolo_loss_kernel, img_size=float(img_size))

    iou_p, parts = pl.pallas_call(
        kernel,
        grid=(M_pad // TM,),
        in_specs=[pl.BlockSpec((C_PAD, TM), lambda i: (0, i)),
                  pl.BlockSpec((C_PAD, TM), lambda i: (0, i))],
        out_specs=(pl.BlockSpec((2, TM), lambda i: (0, i)),
                   pl.BlockSpec((2, TM), lambda i: (0, i))),
        out_shape=(jax.ShapeDtypeStruct((2, M_pad), jnp.float32),
                   jax.ShapeDtypeStruct((2, M_pad), jnp.float32)),
        # No cross-step state (per-block partial outputs) -> the cell axis can
        # be sharded across TensorCores on v7x.
        compiler_params=pltpu.CompilerParams(
            dimension_semantics=("parallel",)),
    )(pred_p, target_p)

    cls_loss = jnp.sum(parts[0, :])         # padded lanes contribute exactly 0
    noobj_loss = jnp.sum(parts[1, :])
    return iou_p[:, :M], cls_loss, noobj_loss


def yolo_loss_pallas(pred, target, img_size=IMG_SIZE):
    """Mirrors YOLOLoss.forward with fixed shapes.

    Returns:
      iou:        (2, N*S*S) float32 — IoU of (box 1, box 2) for every grid
                  cell; entries for cells without an object are exactly 0.
      cls_loss:   sum-squared class-probability loss over object cells.
      noobj_loss: sum-squared confidence loss over no-object cells.
    """
    return _yolo_loss_impl(pred, target, float(img_size))


# ------------- pure-numpy reference (original ragged semantics) -------------
def _ref(pred, target, img_size=IMG_SIZE):
    pred = np.asarray(pred, np.float32)
    target = np.asarray(target, np.float32)
    obj = (target[:, :, :, 4] > 0).reshape(-1)
    noobj = (target[:, :, :, 4] == 0).reshape(-1)
    pf, tf = pred.reshape(-1, N_CH), target.reshape(-1, N_CH)
    po, to = pf[obj], tf[obj]
    pn, tn = pf[noobj], tf[noobj]
    cls_loss = np.sum((po[:, 10:] - to[:, 10:]) ** 2)
    cp = np.concatenate([pn[:, 4], pn[:, 9]])
    ct = np.concatenate([tn[:, 4], tn[:, 9]])
    noobj_loss = np.sum((cp - ct) ** 2)
    bp = np.concatenate([po[:, :4], po[:, 5:9]], axis=0) * img_size
    bt = np.concatenate([to[:, :4], to[:, 5:9]], axis=0) * img_size
    p_tl, p_br = bp[:, :2] - 0.5 * bp[:, 2:], bp[:, :2] + 0.5 * bp[:, 2:]
    t_tl, t_br = bt[:, :2] - 0.5 * bt[:, 2:], bt[:, :2] + 0.5 * bt[:, 2:]
    tl = np.maximum(p_tl, t_tl)
    br = np.minimum(p_br, t_br)
    inter = (np.maximum(0.0, br[:, 0] - tl[:, 0] + 1.0)
             * np.maximum(0.0, br[:, 1] - tl[:, 1] + 1.0))
    pa = (bp[:, 2] + 1.0) * (bp[:, 3] + 1.0)
    ta = (bt[:, 2] + 1.0) * (bt[:, 3] + 1.0)
    return inter / (pa + ta - inter), cls_loss, noobj_loss


if __name__ == "__main__":
    batch = 2
    key = jax.random.PRNGKey(0)
    k1, k2 = jax.random.split(key)
    pred = jax.random.uniform(k1, (batch, S, S, N_CH), dtype=jnp.float32)
    target = jax.random.uniform(k2, (batch, S, S, N_CH), dtype=jnp.float32)

    # Deterministic obj / no-obj pattern: every 4th cell contains an object
    # (strictly positive confidence); the rest have confidence exactly 0.
    cell_idx = jnp.arange(batch * S * S).reshape(batch, S, S)
    has_obj = (cell_idx % 4) == 0
    conf = jnp.where(has_obj, 0.5 + 0.5 * target[:, :, :, 4], 0.0)
    target = target.at[:, :, :, 4].set(conf)

    iou_map, cls_loss, noobj_loss = yolo_loss_pallas(pred, target)
    jax.block_until_ready((iou_map, cls_loss, noobj_loss))

    # ---- verification (host work below is test-harness only, not the op) ----
    pred_np, target_np = np.asarray(pred), np.asarray(target)
    iou_ref_vals, cls_ref, noobj_ref = _ref(pred_np, target_np)

    obj_idx = np.nonzero(target_np[:, :, :, 4].reshape(-1) > 0)[0]
    iou_np = np.asarray(iou_map)
    iou_gathered = np.concatenate([iou_np[0, obj_idx], iou_np[1, obj_idx]])
    # IoU uses the EUP approximate reciprocal -> slightly looser tolerance.
    assert np.allclose(iou_gathered, iou_ref_vals, rtol=2e-3, atol=2e-3)

    non_obj = np.setdiff1d(np.arange(iou_np.shape[1]), obj_idx)
    assert np.all(iou_np[:, non_obj] == 0.0)

    assert np.allclose(float(cls_loss), cls_ref, rtol=1e-4, atol=1e-3)
    assert np.allclose(float(noobj_loss), noobj_ref, rtol=1e-4, atol=1e-3)

    print("KERNEL_OK")
</pallas_src>

<mosaic_0001>
module attributes {stable_mosaic.version = 11 : i64} {
  func.func @_yolo_loss_kernel(%arg0: i32, %arg1: memref<32x128xf32, #tpu.memory_space<vmem>>, %arg2: memref<32x128xf32, #tpu.memory_space<vmem>>, %arg3: memref<2x128xf32, #tpu.memory_space<vmem>>, %arg4: memref<2x128xf32, #tpu.memory_space<vmem>>) attributes {dimension_semantics = [#tpu.dimension_semantics<parallel>], iteration_bounds = array<i64: 1>, scalar_prefetch = 0 : i64, scratch_operands = 0 : i64, tpu.core_type = #tpu.core_type<tc>, window_params = [{transform_indices = @transform_0, window_bounds = array<i64: 32, 128>}, {transform_indices = @transform_1, window_bounds = array<i64: 32, 128>}, {transform_indices = @transform_2, window_bounds = array<i64: 2, 128>}, {transform_indices = @transform_3, window_bounds = array<i64: 2, 128>}]} {
    %c0 = arith.constant 0 : index
    %c0_0 = arith.constant 0 : index
    %0 = vector.load %arg1[%c0, %c0_0] : memref<32x128xf32, #tpu.memory_space<vmem>>, vector<32x128xf32>
    %c0_1 = arith.constant 0 : index
    %c0_2 = arith.constant 0 : index
    %1 = vector.load %arg2[%c0_1, %c0_2] : memref<32x128xf32, #tpu.memory_space<vmem>>, vector<32x128xf32>
    %2 = vector.extract_strided_slice %1 {offsets = [28, 0], sizes = [1, 128], strides = [1, 1]} : vector<32x128xf32> to vector<1x128xf32>
    %cst = arith.constant 0.000000e+00 : f32
    %3 = vector.broadcast %cst : f32 to vector<1x128xf32>
    %4 = arith.cmpf ogt, %2, %3 : vector<1x128xf32>
    %5 = arith.extui %4 : vector<1x128xi1> to vector<1x128xi32>
    %6 = arith.sitofp %5 : vector<1x128xi32> to vector<1x128xf32>
    %cst_3 = arith.constant 0.000000e+00 : f32
    %7 = vector.broadcast %cst_3 : f32 to vector<1x128xf32>
    %8 = arith.cmpf oeq, %2, %7 : vector<1x128xf32>
    %9 = arith.extui %8 : vector<1x128xi1> to vector<1x128xi32>
    %10 = arith.sitofp %9 : vector<1x128xi32> to vector<1x128xf32>
    %11 = vector.extract_strided_slice %0 {offsets = [8, 0], sizes = [20, 128], strides = [1, 1]} : vector<32x128xf32> to vector<20x128xf32>
    %12 = vector.extract_strided_slice %1 {offsets = [8, 0], sizes = [20, 128], strides = [1, 1]} : vector<32x128xf32> to vector<20x128xf32>
    %13 = arith.subf %11, %12 : vector<20x128xf32>
    %14 = arith.mulf %13, %13 : vector<20x128xf32>
    %cst_4 = arith.constant dense<0.000000e+00> : vector<128xf32>
    %15 = vector.multi_reduction <add>, %14, %cst_4 [0] : vector<20x128xf32> to vector<128xf32>
    %16 = vector.shape_cast %15 : vector<128xf32> to vector<1x128xf32>
    %17 = arith.mulf %16, %6 : vector<1x128xf32>
    %c0_5 = arith.constant 0 : index
    %c0_6 = arith.constant 0 : index
    %18 = vector.load %arg4[%c0_5, %c0_6] : memref<2x128xf32, #tpu.memory_space<vmem>>, vector<1x128xf32>
    tpu.vector_store %arg4[%c0_5, %c0_6], %17 {strides = array<i32>} : memref<2x128xf32, #tpu.memory_space<vmem>>, vector<1x128xf32>,
    %19 = vector.extract_strided_slice %0 {offsets = [28, 0], sizes = [2, 128], strides = [1, 1]} : vector<32x128xf32> to vector<2x128xf32>
    %20 = vector.extract_strided_slice %1 {offsets = [28, 0], sizes = [2, 128], strides = [1, 1]} : vector<32x128xf32> to vector<2x128xf32>
    %21 = arith.subf %19, %20 : vector<2x128xf32>
    %22 = arith.mulf %21, %21 : vector<2x128xf32>
    %cst_7 = arith.constant dense<0.000000e+00> : vector<128xf32>
    %23 = vector.multi_reduction <add>, %22, %cst_7 [0] : vector<2x128xf32> to vector<128xf32>
    %24 = vector.shape_cast %23 : vector<128xf32> to vector<1x128xf32>
    %25 = arith.mulf %24, %10 : vector<1x128xf32>
    %c1 = arith.constant 1 : index
    %c0_8 = arith.constant 0 : index
    %26 = vector.load %arg4[%c1, %c0_8] : memref<2x128xf32, #tpu.memory_space<vmem>>, vector<1x128xf32>
    tpu.vector_store %arg4[%c1, %c0_8], %25 {strides = array<i32>} : memref<2x128xf32, #tpu.memory_space<vmem>>, vector<1x128xf32>,
    %27 = vector.extract_strided_slice %0 {offsets = [0, 0], sizes = [8, 128], strides = [1, 1]} : vector<32x128xf32> to vector<8x128xf32>
    %cst_9 = arith.constant 4.480000e+02 : f32
    %28 = vector.broadcast %cst_9 : f32 to vector<8x128xf32>
    %29 = arith.mulf %27, %28 : vector<8x128xf32>
    %30 = vector.extract_strided_slice %1 {offsets = [0, 0], sizes = [8, 128], strides = [1, 1]} : vector<32x128xf32> to vector<8x128xf32>
    %cst_10 = arith.constant 4.480000e+02 : f32
    %31 = vector.broadcast %cst_10 : f32 to vector<8x128xf32>
    %32 = arith.mulf %30, %31 : vector<8x128xf32>
    %33 = vector.extract_strided_slice %29 {offsets = [0, 0], sizes = [4, 128], strides = [1, 1]} : vector<8x128xf32> to vector<4x128xf32>
    %34 = vector.extract_strided_slice %29 {offsets = [4, 0], sizes = [4, 128], strides = [1, 1]} : vector<8x128xf32> to vector<4x128xf32>
    %35 = vector.extract_strided_slice %32 {offsets = [0, 0], sizes = [4, 128], strides = [1, 1]} : vector<8x128xf32> to vector<4x128xf32>
    %36 = vector.extract_strided_slice %32 {offsets = [4, 0], sizes = [4, 128], strides = [1, 1]} : vector<8x128xf32> to vector<4x128xf32>
    %cst_11 = arith.constant 5.000000e-01 : f32
    %37 = vector.broadcast %cst_11 : f32 to vector<4x128xf32>
    %38 = arith.mulf %37, %34 : vector<4x128xf32>
    %39 = arith.subf %33, %38 : vector<4x128xf32>
    %cst_12 = arith.constant 5.000000e-01 : f32
    %40 = vector.broadcast %cst_12 : f32 to vector<4x128xf32>
    %41 = arith.mulf %40, %36 : vector<4x128xf32>
    %42 = arith.subf %35, %41 : vector<4x128xf32>
    %43 = arith.maximumf %39, %42 : vector<4x128xf32>
    %cst_13 = arith.constant 5.000000e-01 : f32
    %44 = vector.broadcast %cst_13 : f32 to vector<4x128xf32>
    %45 = arith.mulf %44, %34 : vector<4x128xf32>
    %46 = arith.addf %33, %45 : vector<4x128xf32>
    %cst_14 = arith.constant 5.000000e-01 : f32
    %47 = vector.broadcast %cst_14 : f32 to vector<4x128xf32>
    %48 = arith.mulf %47, %36 : vector<4x128xf32>
    %49 = arith.addf %35, %48 : vector<4x128xf32>
    %50 = arith.minimumf %46, %49 : vector<4x128xf32>
    %51 = arith.subf %50, %43 : vector<4x128xf32>
    %cst_15 = arith.constant 1.000000e+00 : f32
    %52 = vector.broadcast %cst_15 : f32 to vector<4x128xf32>
    %53 = arith.addf %51, %52 : vector<4x128xf32>
    %cst_16 = arith.constant 0.000000e+00 : f32
    %54 = vector.broadcast %cst_16 : f32 to vector<4x128xf32>
    %55 = arith.maximumf %53, %54 : vector<4x128xf32>
    %56 = vector.extract_strided_slice %55 {offsets = [0, 0], sizes = [2, 128], strides = [1, 1]} : vector<4x128xf32> to vector<2x128xf32>
    %57 = vector.extract_strided_slice %55 {offsets = [2, 0], sizes = [2, 128], strides = [1, 1]} : vector<4x128xf32> to vector<2x128xf32>
    %58 = arith.mulf %56, %57 : vector<2x128xf32>
    %59 = vector.extract_strided_slice %34 {offsets = [0, 0], sizes = [2, 128], strides = [1, 1]} : vector<4x128xf32> to vector<2x128xf32>
    %cst_17 = arith.constant 1.000000e+00 : f32
    %60 = vector.broadcast %cst_17 : f32 to vector<2x128xf32>
    %61 = arith.addf %59, %60 : vector<2x128xf32>
    %62 = vector.extract_strided_slice %34 {offsets = [2, 0], sizes = [2, 128], strides = [1, 1]} : vector<4x128xf32> to vector<2x128xf32>
    %cst_18 = arith.constant 1.000000e+00 : f32
    %63 = vector.broadcast %cst_18 : f32 to vector<2x128xf32>
    %64 = arith.addf %62, %63 : vector<2x128xf32>
    %65 = arith.mulf %61, %64 : vector<2x128xf32>
    %66 = vector.extract_strided_slice %36 {offsets = [0, 0], sizes = [2, 128], strides = [1, 1]} : vector<4x128xf32> to vector<2x128xf32>
    %cst_19 = arith.constant 1.000000e+00 : f32
    %67 = vector.broadcast %cst_19 : f32 to vector<2x128xf32>
    %68 = arith.addf %66, %67 : vector<2x128xf32>
    %69 = vector.extract_strided_slice %36 {offsets = [2, 0], sizes = [2, 128], strides = [1, 1]} : vector<4x128xf32> to vector<2x128xf32>
    %cst_20 = arith.constant 1.000000e+00 : f32
    %70 = vector.broadcast %cst_20 : f32 to vector<2x128xf32>
    %71 = arith.addf %69, %70 : vector<2x128xf32>
    %72 = arith.mulf %68, %71 : vector<2x128xf32>
    %73 = arith.addf %65, %72 : vector<2x128xf32>
    %74 = arith.subf %73, %58 : vector<2x128xf32>
    %75 = tpu.reciprocal %74 {approx = true} : vector<2x128xf32> -> vector<2x128xf32>
    %76 = arith.mulf %58, %75 : vector<2x128xf32>
    %cst_21 = arith.constant 0.000000e+00 : f32
    %77 = vector.shape_cast %4 : vector<1x128xi1> to vector<1x128xi1>
    %78 = vector.broadcast %77 : vector<1x128xi1> to vector<2x128xi1>
    %79 = vector.broadcast %cst_21 : f32 to vector<2x128xf32>
    %80 = arith.select %78, %76, %79 : vector<2x128xi1>, vector<2x128xf32>
    %c0_22 = arith.constant 0 : index
    %c0_23 = arith.constant 0 : index
    %81 = vector.load %arg3[%c0_22, %c0_23] : memref<2x128xf32, #tpu.memory_space<vmem>>, vector<2x128xf32>
    tpu.vector_store %arg3[%c0_22, %c0_23], %80 {strides = array<i32>} : memref<2x128xf32, #tpu.memory_space<vmem>>, vector<2x128xf32>,
    return
  }
  func.func @transform_0(%arg0: i32) -> (i32, i32) {
    %c0_i32 = arith.constant 0 : i32
    %c0_i32_0 = arith.constant 0 : i32
    return %c0_i32, %arg0 : i32, i32
  }
  func.func @transform_1(%arg0: i32) -> (i32, i32) {
    %c0_i32 = arith.constant 0 : i32
    %c0_i32_0 = arith.constant 0 : i32
    return %c0_i32, %arg0 : i32, i32
  }
  func.func @transform_2(%arg0: i32) -> (i32, i32) {
    %c0_i32 = arith.constant 0 : i32
    %c0_i32_0 = arith.constant 0 : i32
    return %c0_i32, %arg0 : i32, i32
  }
  func.func @transform_3(%arg0: i32) -> (i32, i32) {
    %c0_i32 = arith.constant 0 : i32
    %c0_i32_0 = arith.constant 0 : i32
    return %c0_i32, %arg0 : i32, i32
  }
}

</mosaic_0001>

<bundles_post_ra>
// kernel: _yolo_loss_impl.1
= control target key start
LH: loop header
LB: loop body
LE: loop exit
PB: predicated region body
PF: predicated region fallthrough
CT: control target
= control target key end

     0   :  { %s228_s0 = inlined_call_operand.vmem [shape: f32[32,128], index: 0, kind: input, shape index: {}]   ;;  %s229_s1 = inlined_call_operand.vmem [shape: f32[32,128], index: 1, kind: input, shape index: {}]   ;;  %s230_s2 = inlined_call_operand.hbm [shape: f32[2,128], index: 2, kind: output, shape index: {0}]   ;;  %s231_s3 = inlined_call_operand.vmem [shape: f32[2,128], index: 3, kind: output, shape index: {1}]  }
   0x1   :  { %v14_v0 = vld [vmem:[%s228_s0] sm:$0xff]  ;;  %v17_v1 = vld [vmem:[%s228_s0 + $0x18] sm:$0xff]  ;;  %v15_v7 = vld [vmem:[%s228_s0 + $0x8] sm:$0xff] }
   0x2   :  { %v18_v2 = vld [vmem:[%s229_s1] sm:$0xff]  ;;  %v193_v3 = vld [vmem:[%s229_s1 + $0x18] sm:$0xff]  ;;  %v59_v4 = vmul.f32 448.0, %v14_v0  ;;  %v19_v8 = vld [vmem:[%s229_s1 + $0x8] sm:$0xff] }
   0x3   :  { %v60_v5 = vmul.f32 448.0, %v18_v2  ;;  %v30_v6 = vsub.f32 %v17_v1, %v193_v3  ;;  %v16_v11 = vld [vmem:[%s228_s0 + $0x10] sm:$0xff] }
   0x4   :  { %v61_v9 = vmul.f32 0.5, %v59_v4  ;;  %v20_v12 = vld [vmem:[%s229_s1 + $0x10] sm:$0xff] }
   0x5   :  { %v66_v10 = vmul.f32 0.5, %v60_v5 }
   0x6   :  { %9 = vsyncpa [#allocation3], 0  ;;  %v63_v13 = vrot.slane %v61_v9, 4  ;;  %v28_v15 = vsub.f32 %v15_v7, %v19_v8  ;;  %vm35_vm0 = vcmask 1043456   ;;  %v33_v16 = vmul.f32 %v30_v6, %v30_v6  ;;  %s160_s30 = smov [#allocation2]  }
   0x7   :  { %v68_v14 = vrot.slane %v66_v10, 4  ;;  %v82_v17 = vadd.f32 1.0, %v59_v4  ;;  %v87_v18 = vadd.f32 1.0, %v60_v5  ;;  %v29_v19 = vsub.f32 %v16_v11, %v20_v12  ;;  %s115_s4 = sshll.u32 %s160_s30, 4  ;;  %s116_s4 = int_to_ptr.vmem [resolvable:$true] %s115_s4 }
   0x8   :  { %v65_v20 = vsub.f32 %v59_v4, %v63_v13  ;;  %v72_v22 = vadd.f32 %v63_v13, %v59_v4  ;;  %v31_v24 = vmul.f32 %v28_v15, %v28_v15  ;;  %vm49_vm1 = vcmask 1041408   ;;  %s134_s5 = scalar_lea.vmem %s116_s4, 32  ;;  %p139_p1 = scmp.lt.s32.totalorder %s116_s4, %s116_s4 }
   0x9   :  { %v70_v21 = vsub.f32 %v60_v5, %v68_v14  ;;  %v73_v23 = vadd.f32 %v68_v14, %v60_v5  ;;  %v32_v27 = vmul.f32 %v29_v19, %v29_v19  ;;  %v84_v28 = vrot.slane %v82_v17, 2  ;;  %p135_p0 = scmp.ne.s32.totalorder %s116_s4, %s134_s5  ;;  %p140_p2 = scmp.lt.s32.totalorder %s134_s5, %s134_s5 }
   0xa   :  { %v36_v29 = vsel %vm35_vm0, %v33_v16, 0.0  ;;  %v47_v30 = vrot.slane %v33_v16, 4  ;;  %v89_v32 = vrot.slane %v87_v18, 2  ;;  %vm25_vm2 = vcmp.eq.f32.partialorder %v193_v3, 0.0 }
   0xb   :  { %v71_v25 = vmax.f32 %v65_v20, %v70_v21  ;;  %v74_v26 = vmin.f32 %v72_v22, %v73_v23  ;;  %v34_v33 = vadd.f32 %v32_v27, %v31_v24  ;;  %v86_v38 = vmul.f32 %v84_v28, %v82_v17  ;;  %p141_p3 = por %p140_p2, %p139_p1 }
   0xc   :  { %v50_v34 = vsel %vm49_vm1, %v47_v30, 0.0  ;;  %v91_v40 = vmul.f32 %v89_v32, %v87_v18  ;;  %v102_v51 = vlaneseq  ;;  %v158_v54 = vmov 0.0  }
   0xd   :  { %v75_v31 = vsub.f32 %v74_v26, %v71_v25  ;;  %v37_v36 = vadd.f32 %v36_v29, %v34_v33  ;;  %v51_v37 = vrot.slane %v50_v34, 4  ;;  %v128_v55 = vsel %vm25_vm2, 1.0, %v158_v54  ;;  %p142_p4 = pnand %p141_p3, %p135_p0 }
   0xe   :  { %v92_v47 = vadd.f32 %v91_v40, %v86_v38  ;;  %vm22_vm3 = vcmp.gt.f32.partialorder %v193_v3, 0.0  ;;  %v103_v60 = vshrl.u32 %v102_v51, 7  ;;  %v159_v1 = vmov 0  }
   0xf   :  { %v76_v35 = vadd.f32 1.0, %v75_v31  ;;  %v38_v41 = vrot.slane %v37_v36, 4  ;;  %v52_v42 = vadd.f32 %v51_v37, %v50_v34  ;;  %v127_v59 = vsel %vm22_vm3, 1.0, %v158_v54 }
  0x10   :  { %v104_v0 = vsub.s32 4, %v103_v60  ;;  %v23_v2 = vsel %vm22_vm3, 1, %v159_v1 }
  0x11   :  { %v77_v39 = vmax.f32 %v76_v35, 0.0  ;;  %v39_v44 = vadd.f32 %v38_v41, %v37_v36  ;;  %v53_v45 = vrot.slane %v52_v42, 2 }
  0x12   :  { %v105_v3 = vrot.slane %v23_v2, %v104_v0 }
  0x13   :  { %v79_v43 = vrot.slane %v77_v39, 2  ;;  %v40_v48 = vrot.slane %v39_v44, 2  ;;  %v54_v49 = vadd.f32 %v53_v45, %v52_v42 }
  0x14   :  { %vm106_vm4 = vcmp.eq.s32.totalorder %v105_v3, 1 }
  0x15   :  { %v81_v46 = vmul.f32 %v79_v43, %v77_v39  ;;  %v41_v52 = vadd.f32 %v40_v48, %v39_v44  ;;  %v55_v53 = vrot.slane %v54_v49, 1 }
  0x17   :  { %v94_v50 = vrot.slane %v81_v46, 4  ;;  %v42_v57 = vrot.slane %v41_v52, 1  ;;  %v56_v58 = vadd.f32 %v55_v53, %v54_v49 }
  0x19   :  { %v96_v56 = vsub.f32 %v92_v47, %v94_v50  ;;  %v43_v61 = vadd.f32 %v42_v57, %v41_v52  ;;  %v57_v62 = vmul.f32 %v128_v55, %v56_v58 }
  0x1b   :  { %132 = vrcp.f32 %v96_v56  ;;  %v44_v63 = vmul.f32 %v127_v59, %v43_v61  ;;  %58 = vst [vmem:[%s231_s3 - $0x3] sm:$0x10] %v57_v62 }
  0x1d   :  { %45 = vst [vmem:[%s231_s3 - $0x4] sm:$0x10] %v44_v63 }
  0x25   :  { %v133_v4 = vpop.eup %132 }
  0x26   :  { %v99_v5 = vrot.slane %v133_v4, 4 }
  0x28   :  { %v101_v6 = vmul.f32 %v99_v5, %v81_v46 }
  0x2a   :  { %v107_v7 = vsel %vm106_vm4, %v101_v6, 0.0 }
  0x2b   :  { %108 = vst [vmem:[#allocation2] sm:$0x3] %v107_v7 }
  0x2c   :  { %145 = shalt.err (!%p142_p4)
}
  0x2d   :  { %s146_s7 = scalar_lea.hbm %s230_s2, 32 }
  0x2e   :  { %p147_p5 = scmp.ne.s32.totalorder %s230_s2, %s146_s7  ;;  %p150_p6 = scmp.lt.u32.totalorder %s146_s7, %s230_s2 }
  0x30   :  { %p152_p7 = pnand %p150_p6, %p147_p5 }
  0x32   :  { %155 = shalt.err (!%p152_p7)
}
  0x33   :  { %118 = dma.vmem_to_hbm [thread:$0]  %s116_s4, 32, %s230_s2, [#allocation3]  }
  0x34   :  { %156 = dma.done.wait [#allocation3], 32  }
  0x35   :  { %157 = vsyncadd [#allocation3], 4294967264 }
  0x36   :  { %126 = vsyncpa [#allocation3], 1 }

</bundles_post_ra>
